<compile_context>
chip_gen: v6e
topology: v6e:2x2x1
jax: 0.10.0
libtpu: 0.0.40
codegen_flags: <defaults>
</compile_context>

<pallas_src>
import functools

import jax
import jax.numpy as jnp
from jax.experimental import pallas as pl
from jax.experimental.pallas import tpu as pltpu

ALPHA = 1.0
GAMMA = 2.0  # fixed at 2 -> implemented as an explicit square


def _round_up(x, m):
    return ((x + m - 1) // m) * m


def _focal_loss_kernel(logits_ref, targets_ref, out_ref,
                       m_ref, l_ref, t_ref, *,
                       total_n, total_c, tile_n, tile_c):
    # logits_ref : (tile_n, tile_c) float block (any float dtype)
    # targets_ref: (tile_n, 1) int32 block
    # out_ref    : (8, 128) f32 block, resident across the class axis
    # m/l/t_ref  : (tile_n, 1) f32 scratch (running max / sum-exp / tgt logit)
    i = pl.program_id(0)
    j = pl.program_id(1)
    nc = pl.num_programs(1)

    @pl.when(j == 0)
    def _():
        m_ref[...] = jnp.full_like(m_ref, -jnp.inf)
        l_ref[...] = jnp.zeros_like(l_ref)
        t_ref[...] = jnp.zeros_like(t_ref)

    x = logits_ref[...].astype(jnp.float32)                      # (T, Ct)
    tn, tc = x.shape

    # Global column index of this class tile, kept (1, Ct); broadcasting
    # against (T, 1) targets produces the compare without a (T, Ct) iota.
    col = j * tile_c + jax.lax.broadcasted_iota(jnp.int32, (1, tc), 1)

    if total_c % tile_c != 0:
        # Ragged last class tile: padded columns must not affect max / sum-exp.
        x = jnp.where(col < total_c, x, -jnp.inf)

    # --- online log-sum-exp update ---
    m_old = m_ref[...]                                           # (T, 1)
    m_new = jnp.maximum(m_old, jnp.max(x, axis=-1, keepdims=True))
    corr = jnp.exp(m_old - m_new)                                # (T, 1)
    p = jnp.exp(x - m_new)                                       # (T, Ct)
    l_ref[...] = corr * l_ref[...] + jnp.sum(p, axis=-1, keepdims=True)
    m_ref[...] = m_new

    # --- accumulate the raw target logit (exactly one class tile holds it) ---
    tgt = targets_ref[...]                                       # (T, 1) int32
    onehot = col == tgt                                          # (T, Ct)
    t_ref[...] += jnp.sum(jnp.where(onehot, x, 0.0), axis=-1, keepdims=True)

    @pl.when(j == nc - 1)
    def _():
        # cross_entropy(reduction='none'): ce = logsumexp(logits) - logit[target]
        lse = m_ref[...] + jnp.log(l_ref[...])                   # (T, 1)
        ce = lse - t_ref[...]
        # focal: alpha * (1 - p_t)^gamma * ce   (gamma == 2 -> q*q, no EUP pow)
        p_t = jnp.exp(-ce)
        q = 1.0 - p_t
        focal = ALPHA * q * q * ce                               # (T, 1)

        # mask rows beyond N (partial last row tile); select blocks NaN/Inf
        # from padded garbage rows.
        row = i * tile_n + jax.lax.broadcasted_iota(jnp.int32, (tn, 1), 0)
        focal = jnp.where(row < total_n, focal, 0.0)
        partial = jnp.sum(focal)

        # Lane-dense (8, 128) output block: partial at [0, 0], zeros elsewhere,
        # so the wrapper's contiguous jnp.sum is exact.
        rr = jax.lax.broadcasted_iota(jnp.int32, (8, 128), 0)
        cc = jax.lax.broadcasted_iota(jnp.int32, (8, 128), 1)
        out_ref[...] = jnp.where((rr == 0) & (cc == 0), partial, 0.0)


def _vmem_limit_bytes():
    # Generation-aware VMEM limit: v7x has 64 MiB/TC physical, v5e/v6e 128 MiB.
    cap = 64 * 1024 * 1024  # conservative default if the query fails
    try:
        info = pltpu.get_tpu_info()
        cap = int(getattr(info, "vmem_capacity_bytes", cap))
    except Exception:
        pass
    # leave ~25% headroom for compiler scratch; never ask for more than 96 MiB
    return max(32 * 1024 * 1024, min(cap * 3 // 4, 96 * 1024 * 1024))


def _pick_tiles(n, c, itemsize, vmem_limit):
    """Pick (tile_n, tile_c) from an explicit VMEM budget.

    Per-element cost model: 2x input (double-buffered DMA window) plus ~5x f32
    for the intermediates the kernel materializes (f32 cast, shifted, exp,
    compares/selects).
    """
    budget = int(vmem_limit * 0.6)
    per_elem = 2 * itemsize + 5 * 4
    n_pad = _round_up(n, 16)

    # Keep the whole class axis un-tiled unless that forces row tiles < 64.
    if per_elem * c * 64 <= budget:
        tile_c = c
    else:
        tile_c = max(128, (budget // (per_elem * 256)) // 128 * 128)
        if tile_c >= c:
            tile_c = c

    tile_n = budget // max(per_elem * tile_c, 1)
    tile_n = max(16, (tile_n // 16) * 16)        # multiple of 16 (bf16 packing)
    tile_n = min(tile_n, n_pad)
    # Keep >= 8 row tiles so the "parallel" axis feeds both v7x TensorCores
    # and the double-buffered pipeline stays deep (no-op on v5e/v6e).
    tile_n = min(tile_n, max(16, _round_up(pl.cdiv(n, 8), 16)))
    return tile_n, tile_c


def custom_focal_loss(logits, targets, tile_n=None, tile_c=None):
    """logits: (N, C) float (f32 or bf16), targets: (N,) int. Returns scalar f32."""
    n, c = logits.shape
    vmem_limit = _vmem_limit_bytes()
    auto_tn, auto_tc = _pick_tiles(n, c, jnp.dtype(logits.dtype).itemsize,
                                   vmem_limit)
    if tile_n is None:
        tile_n = auto_tn
    if tile_c is None:
        tile_c = auto_tc

    num_row_tiles = pl.cdiv(n, tile_n)
    num_c_tiles = pl.cdiv(c, tile_c)
    targets_2d = targets.astype(jnp.int32).reshape(n, 1)

    kernel = functools.partial(_focal_loss_kernel, total_n=n, total_c=c,
                               tile_n=tile_n, tile_c=tile_c)

    partials = pl.pallas_call(
        kernel,
        out_shape=jax.ShapeDtypeStruct((num_row_tiles * 8, 128), jnp.float32),
        grid=(num_row_tiles, num_c_tiles),
        in_specs=[
            pl.BlockSpec((tile_n, tile_c), lambda i, j: (i, j)),  # logits tile
            pl.BlockSpec((tile_n, 1), lambda i, j: (i, 0)),       # targets tile
        ],
        out_specs=pl.BlockSpec((8, 128), lambda i, j: (i, 0)),
        scratch_shapes=[
            pltpu.VMEM((tile_n, 1), jnp.float32),   # running max
            pltpu.VMEM((tile_n, 1), jnp.float32),   # running sum-exp
            pltpu.VMEM((tile_n, 1), jnp.float32),   # gathered target logit
        ],
        compiler_params=pltpu.CompilerParams(
            dimension_semantics=("parallel", "arbitrary"),
            vmem_limit_bytes=vmem_limit),
    )(logits, targets_2d)

    # Each tile wrote its partial at [0, 0] of its block and zeros elsewhere,
    # so a single contiguous reduce is both cheap and exact.
    return jnp.sum(partials) / jnp.float32(n)


def _reference(logits, targets):
    # pure-JAX reference of the PyTorch forward (same input dtype, f32 math)
    lp = jax.nn.log_softmax(logits.astype(jnp.float32), axis=-1)
    ce = -jnp.take_along_axis(lp, targets[:, None].astype(jnp.int32), axis=-1)[:, 0]
    p_t = jnp.exp(-ce)
    focal = ALPHA * (1.0 - p_t) ** GAMMA * ce
    return jnp.mean(focal)


if __name__ == "__main__":
    key = jax.random.PRNGKey(0)
    k1, k2, k3, k4 = jax.random.split(key, 4)

    # --- Test 1: bf16 logits, class axis un-tiled, auto row tile ---
    N1, C1 = 64, 128
    logits1 = jax.random.normal(k1, (N1, C1), dtype=jnp.float32).astype(jnp.bfloat16)
    targets1 = jax.random.randint(k2, (N1,), 0, C1, dtype=jnp.int32)
    loss1 = jax.block_until_ready(custom_focal_loss(logits1, targets1))
    ref1 = _reference(logits1, targets1)
    assert jnp.allclose(loss1, ref1, rtol=1e-5, atol=1e-5), (loss1, ref1)

    # --- Test 2: f32 logits, forced class tiling (online LSE + ragged column
    # mask) and a partial last row tile (row mask) ---
    N2, C2 = 50, 320
    logits2 = jax.random.normal(k3, (N2, C2), dtype=jnp.float32)
    targets2 = jax.random.randint(k4, (N2,), 0, C2, dtype=jnp.int32)
    loss2 = jax.block_until_ready(
        custom_focal_loss(logits2, targets2, tile_n=16, tile_c=128))
    ref2 = _reference(logits2, targets2)
    assert jnp.allclose(loss2, ref2, rtol=1e-5, atol=1e-5), (loss2, ref2)

    print("KERNEL_OK")
</pallas_src>

<mosaic_0001>
module attributes {stable_mosaic.version = 11 : i64} {
  func.func @_focal_loss_kernel(%arg0: i32, %arg1: i32, %arg2: memref<16x128xbf16, #tpu.memory_space<vmem>>, %arg3: memref<16x1xi32, #tpu.memory_space<vmem>>, %arg4: memref<8x128xf32, #tpu.memory_space<vmem>>, %arg5: memref<16x1xf32, #tpu.memory_space<vmem>>, %arg6: memref<16x1xf32, #tpu.memory_space<vmem>>, %arg7: memref<16x1xf32, #tpu.memory_space<vmem>>) attributes {dimension_semantics = [#tpu.dimension_semantics<parallel>, #tpu.dimension_semantics<arbitrary>], iteration_bounds = array<i64: 4, 1>, scalar_prefetch = 0 : i64, scratch_operands = 3 : i64, tpu.core_type = #tpu.core_type<tc>, window_params = [{transform_indices = @transform_0, window_bounds = array<i64: 16, 128>}, {transform_indices = @transform_1, window_bounds = array<i64: 16, 1>}, {transform_indices = @transform_2, window_bounds = array<i64: 8, 128>}]} {
    %c0_i32 = arith.constant 0 : i32
    %0 = arith.cmpi eq, %arg1, %c0_i32 : i32
    %1 = arith.extui %0 : i1 to i32
    %c0_i32_0 = arith.constant 0 : i32
    %2 = arith.cmpi ne, %1, %c0_i32_0 : i32
    scf.if %2 {
      %cst_21 = arith.constant 0xFF800000 : f32
      %39 = vector.broadcast %cst_21 : f32 to vector<16x1xf32>
      %c0_22 = arith.constant 0 : index
      %c0_23 = arith.constant 0 : index
      %40 = vector.load %arg5[%c0_22, %c0_23] : memref<16x1xf32, #tpu.memory_space<vmem>>, vector<16x1xf32>
      tpu.vector_store %arg5[%c0_22, %c0_23], %39 {strides = array<i32>} : memref<16x1xf32, #tpu.memory_space<vmem>>, vector<16x1xf32>,
      %cst_24 = arith.constant 0.000000e+00 : f32
      %41 = vector.broadcast %cst_24 : f32 to vector<16x1xf32>
      %c0_25 = arith.constant 0 : index
      %c0_26 = arith.constant 0 : index
      %42 = vector.load %arg6[%c0_25, %c0_26] : memref<16x1xf32, #tpu.memory_space<vmem>>, vector<16x1xf32>
      tpu.vector_store %arg6[%c0_25, %c0_26], %41 {strides = array<i32>} : memref<16x1xf32, #tpu.memory_space<vmem>>, vector<16x1xf32>,
      %cst_27 = arith.constant 0.000000e+00 : f32
      %43 = vector.broadcast %cst_27 : f32 to vector<16x1xf32>
      %c0_28 = arith.constant 0 : index
      %c0_29 = arith.constant 0 : index
      %44 = vector.load %arg7[%c0_28, %c0_29] : memref<16x1xf32, #tpu.memory_space<vmem>>, vector<16x1xf32>
      tpu.vector_store %arg7[%c0_28, %c0_29], %43 {strides = array<i32>} : memref<16x1xf32, #tpu.memory_space<vmem>>, vector<16x1xf32>,
    } else {
    }
    %c0 = arith.constant 0 : index
    %c0_1 = arith.constant 0 : index
    %3 = vector.load %arg2[%c0, %c0_1] : memref<16x128xbf16, #tpu.memory_space<vmem>>, vector<16x128xbf16>
    %4 = arith.extf %3 : vector<16x128xbf16> to vector<16x128xf32>
    %c128_i32 = arith.constant 128 : i32
    %5 = arith.muli %arg1, %c128_i32 : i32
    %6 = tpu.iota {dimensions = array<i32: 1>} : vector<1x128xi32>
    %7 = vector.broadcast %5 : i32 to vector<1x128xi32>
    %8 = arith.addi %7, %6 : vector<1x128xi32>
    %c0_2 = arith.constant 0 : index
    %c0_3 = arith.constant 0 : index
    %9 = vector.load %arg5[%c0_2, %c0_3] : memref<16x1xf32, #tpu.memory_space<vmem>>, vector<16x1xf32>
    %cst = arith.constant dense<0xFF800000> : vector<16xf32>
    %10 = vector.multi_reduction <maximumf>, %4, %cst [1] : vector<16x128xf32> to vector<16xf32>
    %11 = vector.shape_cast %10 : vector<16xf32> to vector<16x1xf32>
    %12 = arith.maximumf %9, %11 : vector<16x1xf32>
    %13 = arith.subf %9, %12 : vector<16x1xf32>
    %14 = math.exp %13 : vector<16x1xf32>
    %15 = vector.broadcast %12 : vector<16x1xf32> to vector<16x128xf32>
    %16 = arith.subf %4, %15 : vector<16x128xf32>
    %17 = math.exp %16 : vector<16x128xf32>
    %c0_4 = arith.constant 0 : index
    %c0_5 = arith.constant 0 : index
    %18 = vector.load %arg6[%c0_4, %c0_5] : memref<16x1xf32, #tpu.memory_space<vmem>>, vector<16x1xf32>
    %19 = arith.mulf %14, %18 : vector<16x1xf32>
    %cst_6 = arith.constant dense<0.000000e+00> : vector<16xf32>
    %20 = vector.multi_reduction <add>, %17, %cst_6 [1] : vector<16x128xf32> to vector<16xf32>
    %21 = vector.shape_cast %20 : vector<16xf32> to vector<16x1xf32>
    %22 = arith.addf %19, %21 : vector<16x1xf32>
    %c0_7 = arith.constant 0 : index
    %c0_8 = arith.constant 0 : index
    %23 = vector.load %arg6[%c0_7, %c0_8] : memref<16x1xf32, #tpu.memory_space<vmem>>, vector<16x1xf32>
    tpu.vector_store %arg6[%c0_7, %c0_8], %22 {strides = array<i32>} : memref<16x1xf32, #tpu.memory_space<vmem>>, vector<16x1xf32>,
    %c0_9 = arith.constant 0 : index
    %c0_10 = arith.constant 0 : index
    %24 = vector.load %arg5[%c0_9, %c0_10] : memref<16x1xf32, #tpu.memory_space<vmem>>, vector<16x1xf32>
    tpu.vector_store %arg5[%c0_9, %c0_10], %12 {strides = array<i32>} : memref<16x1xf32, #tpu.memory_space<vmem>>, vector<16x1xf32>,
    %c0_11 = arith.constant 0 : index
    %c0_12 = arith.constant 0 : index
    %25 = vector.load %arg3[%c0_11, %c0_12] : memref<16x1xi32, #tpu.memory_space<vmem>>, vector<16x1xi32>
    %26 = vector.broadcast %8 : vector<1x128xi32> to vector<16x128xi32>
    %27 = vector.broadcast %25 : vector<16x1xi32> to vector<16x128xi32>
    %28 = arith.cmpi eq, %26, %27 : vector<16x128xi32>
    %c0_13 = arith.constant 0 : index
    %c0_14 = arith.constant 0 : index
    %29 = vector.load %arg7[%c0_13, %c0_14] : memref<16x1xf32, #tpu.memory_space<vmem>>, vector<16x1xf32>
    %cst_15 = arith.constant 0.000000e+00 : f32
    %30 = vector.broadcast %cst_15 : f32 to vector<16x128xf32>
    %31 = arith.select %28, %4, %30 : vector<16x128xi1>, vector<16x128xf32>
    %cst_16 = arith.constant dense<0.000000e+00> : vector<16xf32>
    %32 = vector.multi_reduction <add>, %31, %cst_16 [1] : vector<16x128xf32> to vector<16xf32>
    %33 = vector.shape_cast %32 : vector<16xf32> to vector<16x1xf32>
    %34 = arith.addf %29, %33 : vector<16x1xf32>
    %c0_17 = arith.constant 0 : index
    %c0_18 = arith.constant 0 : index
    %35 = vector.load %arg7[%c0_17, %c0_18] : memref<16x1xf32, #tpu.memory_space<vmem>>, vector<16x1xf32>
    tpu.vector_store %arg7[%c0_17, %c0_18], %34 {strides = array<i32>} : memref<16x1xf32, #tpu.memory_space<vmem>>, vector<16x1xf32>,
    %c0_i32_19 = arith.constant 0 : i32
    %36 = arith.cmpi eq, %arg1, %c0_i32_19 : i32
    %37 = arith.extui %36 : i1 to i32
    %c0_i32_20 = arith.constant 0 : i32
    %38 = arith.cmpi ne, %37, %c0_i32_20 : i32
    scf.if %38 {
      %c0_21 = arith.constant 0 : index
      %c0_22 = arith.constant 0 : index
      %39 = vector.load %arg5[%c0_21, %c0_22] : memref<16x1xf32, #tpu.memory_space<vmem>>, vector<16x1xf32>
      %c0_23 = arith.constant 0 : index
      %c0_24 = arith.constant 0 : index
      %40 = vector.load %arg6[%c0_23, %c0_24] : memref<16x1xf32, #tpu.memory_space<vmem>>, vector<16x1xf32>
      %41 = math.log %40 : vector<16x1xf32>
      %42 = arith.addf %39, %41 : vector<16x1xf32>
      %c0_25 = arith.constant 0 : index
      %c0_26 = arith.constant 0 : index
      %43 = vector.load %arg7[%c0_25, %c0_26] : memref<16x1xf32, #tpu.memory_space<vmem>>, vector<16x1xf32>
      %44 = arith.subf %42, %43 : vector<16x1xf32>
      %cst_27 = arith.constant 0.000000e+00 : f32
      %45 = vector.broadcast %cst_27 : f32 to vector<16x1xf32>
      %46 = arith.subf %45, %44 : vector<16x1xf32>
      %47 = math.exp %46 : vector<16x1xf32>
      %cst_28 = arith.constant 1.000000e+00 : f32
      %48 = vector.broadcast %cst_28 : f32 to vector<16x1xf32>
      %49 = arith.subf %48, %47 : vector<16x1xf32>
      %cst_29 = arith.constant 1.000000e+00 : f32
      %50 = vector.broadcast %cst_29 : f32 to vector<16x1xf32>
      %51 = arith.mulf %50, %49 : vector<16x1xf32>
      %52 = arith.mulf %51, %49 : vector<16x1xf32>
      %53 = arith.mulf %52, %44 : vector<16x1xf32>
      %c16_i32 = arith.constant 16 : i32
      %54 = arith.muli %arg0, %c16_i32 : i32
      %55 = tpu.iota {dimensions = array<i32: 0>} : vector<16x1xi32>
      %56 = vector.broadcast %54 : i32 to vector<16x1xi32>
      %57 = arith.addi %56, %55 : vector<16x1xi32>
      %c64_i32 = arith.constant 64 : i32
      %58 = vector.broadcast %c64_i32 : i32 to vector<16x1xi32>
      %59 = arith.cmpi slt, %57, %58 : vector<16x1xi32>
      %cst_30 = arith.constant 0.000000e+00 : f32
      %60 = vector.broadcast %cst_30 : f32 to vector<16x1xf32>
      %61 = arith.select %59, %53, %60 : vector<16x1xi1>, vector<16x1xf32>
      %62 = vector.shape_cast %61 : vector<16x1xf32> to vector<1x16x1xf32>
      %cst_31 = arith.constant dense<0.000000e+00> : vector<1xf32>
      %63 = vector.multi_reduction <add>, %62, %cst_31 [1, 2] : vector<1x16x1xf32> to vector<1xf32>
      %64 = vector.shape_cast %63 : vector<1xf32> to vector<1x1x1xf32>
      %65 = vector.extract %64[0, 0, 0] : f32 from vector<1x1x1xf32>
      %66 = tpu.iota {dimensions = array<i32: 0>} : vector<8x128xi32>
      %67 = tpu.iota {dimensions = array<i32: 1>} : vector<8x128xi32>
      %c0_i32_32 = arith.constant 0 : i32
      %68 = vector.broadcast %c0_i32_32 : i32 to vector<8x128xi32>
      %69 = arith.cmpi eq, %66, %68 : vector<8x128xi32>
      %c0_i32_33 = arith.constant 0 : i32
      %70 = vector.broadcast %c0_i32_33 : i32 to vector<8x128xi32>
      %71 = arith.cmpi eq, %67, %70 : vector<8x128xi32>
      %72 = arith.andi %69, %71 : vector<8x128xi1>
      %cst_34 = arith.constant 0.000000e+00 : f32
      %73 = vector.broadcast %65 : f32 to vector<8x128xf32>
      %74 = vector.broadcast %cst_34 : f32 to vector<8x128xf32>
      %75 = arith.select %72, %73, %74 : vector<8x128xi1>, vector<8x128xf32>
      %c0_35 = arith.constant 0 : index
      %c0_36 = arith.constant 0 : index
      %76 = vector.load %arg4[%c0_35, %c0_36] : memref<8x128xf32, #tpu.memory_space<vmem>>, vector<8x128xf32>
      tpu.vector_store %arg4[%c0_35, %c0_36], %75 {strides = array<i32>} : memref<8x128xf32, #tpu.memory_space<vmem>>, vector<8x128xf32>,
    } else {
    }
    return
  }
  func.func @transform_0(%arg0: i32, %arg1: i32) -> (i32, i32) {
    %c0_i32 = arith.constant 0 : i32
    return %arg0, %arg1 : i32, i32
  }
  func.func @transform_1(%arg0: i32, %arg1: i32) -> (i32, i32) {
    %c0_i32 = arith.constant 0 : i32
    %c0_i32_0 = arith.constant 0 : i32
    return %arg0, %c0_i32 : i32, i32
  }
  func.func @transform_2(%arg0: i32, %arg1: i32) -> (i32, i32) {
    %c0_i32 = arith.constant 0 : i32
    %c0_i32_0 = arith.constant 0 : i32
    return %arg0, %c0_i32 : i32, i32
  }
}

</mosaic_0001>

<bundles_post_ra>
// kernel: tpu_custom_call.1
= control target key start
LH: loop header
LB: loop body
LE: loop exit
PB: predicated region body
PF: predicated region fallthrough
CT: control target
= control target key end

     0   :  { %7 = vsyncpa [#allocation6], 0  ;;  %s753_s0 = inlined_call_operand.vmem [shape: bf16[64,128], index: 0, kind: input, shape index: {}]   ;;  %s754_s1 = inlined_call_operand.vmem [shape: s32[64,1], index: 1, kind: input, shape index: {}]   ;;  %s755_s2 = inlined_call_operand.hbm [shape: f32[32,128], index: 2, kind: output, shape index: {}]  }
   0x1   :  { %9 = vsyncpa [#allocation6 + $0x1], 0  ;;  %s624_s9 = smov 0   ;;  %s626_s10 = smov 0  }
   0x2   :  { %s628_s11 = smov 0   ;;  %s630_s12 = smov 0  }
   0x3   :  { %s632_s13 = smov 0   ;;  %s634_s14 = smov 0  }
   0x4 LB: > { %s430_s15 = sadd.s32 4294967295, %s603_s14   ;;  %s431_s16 = sadd.s32 4294967294, %s603_s14   ;;  %s603_s14 = sphi %s634_s14, %s15_s14   ;;  %s599_s13 = sphi %s632_s13, %s762_s13   ;;  %s595_s12 = sphi %s630_s12, %s761_s12   ;;  %s591_s11 = sphi %s628_s11, %s760_s11   ;;  %s587_s10 = sphi %s626_s10, %s759_s10   ;;  %s583_s9 = sphi %s624_s9, %s758_s9  }
   0x5   : > { %s27_s17 = sadd.s32 1, %s599_s13  ;;  %s88_s18 = sadd.s32 1, %s591_s11 }
   0x6   : > { %p29_p0 = scmp.ge.s32.totalorder %s27_s17, 4  ;;  %p98_p1 = scmp.ne.s32.totalorder %s591_s11, %s587_s10 }
   0x7   : > { %p99_p2 = scmp.eq.s32.totalorder %s430_s15, 3  ;;  %p104_p3 = scmp.ne.s32.totalorder %s587_s10, %s583_s9 }
   0x8   : > { %s764_s17 = smov (%p29_p0, %s27_s17), 0  ;;  %p105_p5 = scmp.eq.s32.totalorder %s431_s16, 3 }
   0x9   : > { %p664_p4 = por %p99_p2, %p98_p1  ;;  %s85_s20 = ssub.s32 %s599_s13, %s764_s17 }
   0xa   : > { %p434_p6 = scmp.ge.s32.totalorder %s603_s14, 1  ;;  %p86_p7 = scmp.eq.s32.totalorder %s85_s20, 0 }
   0xb   : > { %p671_p8 = por %p105_p5, %p104_p3  ;;  %p144_p9 = scmp.lt.s32.totalorder %s603_s14, 5 }
   0xc   : > { %s677_s22 = scalar_select %p86_p7, %s591_s11, %s88_s18  }
   0xd   : > { %p145_p10 = pnand %p434_p6, %p144_p9 }
   0xe   : > { %s436_s23 = sshll.u32 (!%p145_p10), %s595_s12, 1  ;;  %s440_s4 = sshll.u32 (!%p145_p10), %s595_s12, 4 }
   0xf   : > { %148 = sbr.rel (%p145_p10) target bundleno = 723 (0x2d3), region = 28  ;;  %p175_p11 = scmp.lt.s32.totalorder (!%p145_p10), %s436_s23, 7 }
  0x10   : > { %s171_s5 = sand.u32 (!%p145_p10), 1, %s587_s10   ;;  %s442_s7 = sshll.u32 (!%p145_p10), %s595_s12, 7 }
  0x11   : > { %s435_s6 = sshll.u32 (!%p145_p10), %s171_s5, 3  ;;  %s608_s12 = smov (!%p145_p10), [#allocation5]  }
  0x12   : > { %s173_s8 = scalar_lea.vmem (!%p145_p10), [#allocation5], %s435_s6  ;;  %s531_s26 = sshll.u32 (!%p145_p10), %s608_s12, 4  ;;  %s532_s26 = int_to_ptr.vmem [resolvable:$false] %s531_s26 }
  0x13   : > { %s348_s15 = sshll.u32 (!%p145_p10), %s173_s8, 4  ;;  %s349_s15 = int_to_ptr.vmem [resolvable:$true] %s348_s15 }
  0x14   : > { %vm193_vm0 = vcmask 7168   ;;  %v605_v0 = vmov -inf   ;;  %s766_s23 = smov (!%p175_p11, %s436_s23), 7  ;;  %v606_v4 = vmov 0   ;;  %v607_v5 = vmov 0.0   ;;  %s527_s25 = scalar_lea.vmem %s349_s15, 128 }
  0x15   : > { %194 = vst.msk [vmem:[#allocation2] sm:$0xff] %vm193_vm0, %v605_v0  ;;  %195 = vst.msk [vmem:[#allocation2 + $0x8] sm:$0xff] %vm193_vm0, %v605_v0  ;;  %s437_s24 = sshll.u32 %s766_s23, 2  ;;  %509 = vset.pattern.permute.xlu1 %v606_v4  ;;  %510 = vset.pattern.permute.xlu0 %v606_v4  ;;  %s439_s28 = sshll.u32 %s766_s23, 3  ;;  %v205_v16 = vlaneseq }
  0x16   : > { %s181_s27 = scalar_lea.vmem %s753_s0, %s437_s24  ;;  %s187_s3 = scalar_lea.vmem %s754_s1, %s439_s28  ;;  %196 = vst.msk [vmem:[#allocation3] sm:$0xff] %vm193_vm0, %v607_v5  ;;  %197 = vst.msk [vmem:[#allocation3 + $0x8] sm:$0xff] %vm193_vm0, %v607_v5 }
  0x17   : > { %v446_v1 = vld [vmem:[%s181_s27] sm:$0xff]   ;;  %198 = vst.msk [vmem:[#allocation4] sm:$0xff] %vm193_vm0, %v607_v5  ;;  %199 = vst.msk [vmem:[#allocation4 + $0x8] sm:$0xff] %vm193_vm0, %v607_v5  ;;  %v255_v15 = vld [vmem:[%s187_s3 + $0x8] sm:$0xff]  ;;  %v695_v17 = vand.u32 127, %v205_v16  ;;  %s713_s23 = scalar_lea.hbm %s755_s2, %s442_s7  ;;  %s335_s24 = scalar_lea.sflag [#allocation6], %s171_s5 }
  0x18   : > { %v447_v2 = vunpack.c.l.bf16 %v446_v1  ;;  %v448_v3 = vunpack.c.h.bf16 %v446_v1  ;;  %v254_v6 = vld [vmem:[%s187_s3] sm:$0xff]  ;;  %p528_p12 = scmp.ne.s32.totalorder %s349_s15, %s527_s25  ;;  %s533_s27 = scalar_lea.vmem %s532_s26, 256 }
  0x19   : > { %vm329_vm6 = vcmp.eq.s32.totalorder %v695_v17, 0  ;;  %p534_p1 = scmp.lt.s32.totalorder %s349_s15, %s532_s26  ;;  %p535_p2 = scmp.lt.s32.totalorder %s533_s27, %s527_s25 }
  0x1a   : > { %211 = vmax.xlane.f32.xlu0 %v447_v2  ;;  %p529_p13 = pnand %p528_p12, %p664_p4 }
  0x1b   : > { %p536_p3 = por %p535_p2, %p534_p1 }
  0x1c   : > { %v209_v7 = vld [vmem:[#allocation2] sm:$0xff]  ;;  %v210_v10 = vld [vmem:[#allocation2 + $0x8] sm:$0xff]  ;;  %p530_p0 = pneg %p529_p13 }
  0x1d   : > { %v239_v36 = vld [vmem:[#allocation3] sm:$0xff]  ;;  %v240_v40 = vld [vmem:[#allocation3 + $0x8] sm:$0xff] }
  0x1e   : > { %213 = vmax.xlane.f32.xlu0 %v448_v3  ;;  %v264_v30 = vld [vmem:[#allocation4] sm:$0xff]  ;;  %v265_v45 = vld [vmem:[#allocation4 + $0x8] sm:$0xff]  ;;  %p537_p5 = pnand %p536_p3, %p530_p0 }
  0x34   : > { %257 = vperm.xlu0 %510, %v254_v6  }
  0xa3   : > { %v212_v8 = vpop.xlane.xlu0 %211 }
  0xa4   : > { %v215_v9 = vmax.f32 %v209_v7, %v212_v8 }
  0xa6   : > { %v217_v11 = vsub.f32 %v209_v7, %v215_v9  ;;  %252 = vst.msk [vmem:[#allocation2] sm:$0xff] %vm193_vm0, %v215_v9  ;;  %225 = vperm.xlu1 %509, %v215_v9  }
  0xa7   : > { %v214_v12 = vpop.xlane.xlu0 %213 }
  0xa8   : > { %v216_v13 = vmax.f32 %v210_v10, %v214_v12  ;;  %v219_v33 = vmul.f32 1.442695, %v217_v11 }
  0xaa   : > { %v218_v14 = vsub.f32 %v210_v10, %v216_v13  ;;  %253 = vst.msk [vmem:[#allocation2 + $0x8] sm:$0xff] %vm193_vm0, %v216_v13  ;;  %230 = vperm.xlu1 %509, %v216_v13  }
  0xac   : > { %v221_v34 = vmul.f32 1.442695, %v218_v14 }
  0xad   : > { %v279_v52 = vld [vmem:[#allocation2] sm:$0xff] }
  0xae   : > { %260 = vperm.xlu1 %509, %v255_v15  }
  0xaf   : > { %v258_v18 = vpop.permute.xlu0 %257 }
  0xb0   : > { %vm262_vm1 = vcmp.eq.s32.totalorder %v695_v17, %v258_v18 }
  0xb1   : > { %v266_v19 = vsel %vm262_vm1, %v447_v2, 0.0  ;;  %v280_v58 = vld [vmem:[#allocation2 + $0x8] sm:$0xff] }
  0xb2   : > { %268 = vadd.xlane.f32.xlu0 %v266_v19 }
 0x121   : > { %v226_v20 = vpop.permute.xlu1 %225 }
 0x122   : > { %v233_v21 = vsub.f32 %v447_v2, %v226_v20  ;;  %v307_v2 = vshrl.u32 %v205_v16, 7 }
 0x124   : > { %v235_v22 = vmul.f32 1.442695, %v233_v21  ;;  %v308_v5 = vadd.s32 8, %v307_v2  ;;  %vm328_vm5 = vcmp.eq.s32.totalorder %v307_v2, 0 }
 0x125   : > { %v231_v23 = vpop.permute.xlu1 %230  ;;  %vm330_vm7 = vmand %vm328_vm5, %vm329_vm6 }
 0x126   : > { %511 = vpow2.f32 %v235_v22  ;;  %v234_v24 = vsub.f32 %v448_v3, %v231_v23 }
 0x128   : > { %v237_v25 = vmul.f32 1.442695, %v234_v24 }
 0x129   : > { %v261_v27 = vpop.permute.xlu1 %260 }
 0x12a   : > { %513 = vpow2.f32 %v237_v25  ;;  %vm263_vm2 = vcmp.eq.s32.totalorder %v695_v17, %v261_v27 }
 0x12b   : > { %v267_v29 = vsel %vm263_vm2, %v448_v3, 0.0  ;;  %515 = vpow2.f32 %v219_v33  ;;  %v309_v3 = vstv %s440_s4 }
 0x12c   : > { %517 = vpow2.f32 %v221_v34  ;;  %v310_v7 = vadd.s32 %v309_v3, %v307_v2  ;;  %v311_v10 = vadd.s32 %v309_v3, %v308_v5 }
 0x12e   : > { %vm312_vm3 = vcmp.lt.s32.totalorder %v310_v7, 64  ;;  %vm313_vm4 = vcmp.lt.s32.totalorder %v311_v10, 64 }
 0x133   : > { %v512_v26 = vpop.eup %511 }
 0x134   : > { %243 = vadd.xlane.f32.xlu1 %v512_v26 }
 0x137   : > { %v514_v28 = vpop.eup %513 }
 0x138   : > { %245 = vadd.xlane.f32.xlu1 %v514_v28  ;;  %v516_v35 = vpop.eup %515 }
 0x139   : > { %v241_v37 = vmul.f32 %v516_v35, %v239_v36  ;;  %v518_v38 = vpop.eup %517 }
 0x13a   : > { %v242_v42 = vmul.f32 %v518_v38, %v240_v40 }
 0x13b   : > { %v269_v31 = vpop.xlane.xlu0 %268 }
 0x13c   : > { %270 = vadd.xlane.f32.xlu1 %v267_v29  ;;  %v272_v32 = vadd.f32 %v269_v31, %v264_v30 }
 0x13e   : > { %274 = vst.msk [vmem:[#allocation4] sm:$0xff] %vm193_vm0, %v272_v32 }
 0x145   : > { %v289_v53 = vld [vmem:[#allocation4] sm:$0xff] }
 0x1bd   : > { %v244_v39 = vpop.xlane.xlu1 %243 }
 0x1be   : > { %v247_v41 = vadd.f32 %v244_v39, %v241_v37 }
 0x1c0   : > { %250 = vst.msk [vmem:[#allocation3] sm:$0xff] %vm193_vm0, %v247_v41 }
 0x1c1   : > { %v246_v43 = vpop.xlane.xlu1 %245 }
 0x1c2   : > { %v248_v44 = vadd.f32 %v246_v43, %v242_v42 }
 0x1c4   : > { %251 = vst.msk [vmem:[#allocation3 + $0x8] sm:$0xff] %vm193_vm0, %v248_v44 }
 0x1c5   : > { %v271_v46 = vpop.xlane.xlu1 %270 }
 0x1c6   : > { %v273_v47 = vadd.f32 %v271_v46, %v265_v45 }
 0x1c7   : > { %v281_v48 = vld [vmem:[#allocation3] sm:$0xff] }
 0x1c8   : > { %275 = vst.msk [vmem:[#allocation4 + $0x8] sm:$0xff] %vm193_vm0, %v273_v47  ;;  %519 = vlog2.f32 %v281_v48 }
 0x1cb   : > { %v282_v49 = vld [vmem:[#allocation3 + $0x8] sm:$0xff] }
 0x1cc   : > { %521 = vlog2.f32 %v282_v49 }
 0x1cf   : > { %v290_v61 = vld [vmem:[#allocation4 + $0x8] sm:$0xff] }
 0x1d5   : > { %v520_v50 = vpop.eup %519 }
 0x1d6   : > { %v284_v51 = vmul.f32 0.6931472, %v520_v50 }
 0x1d8   : > { %v287_v54 = vadd.f32 %v284_v51, %v279_v52 }
 0x1d9   : > { %v522_v55 = vpop.eup %521 }
 0x1da   : > { %v286_v56 = vmul.f32 0.6931472, %v522_v55  ;;  %v291_v57 = vsub.f32 %v287_v54, %v289_v53 }
 0x1dc   : > { %v288_v59 = vadd.f32 %v286_v56, %v280_v58  ;;  %v293_v60 = vsub.f32 0.0, %v291_v57 }
 0x1de   : > { %v292_v62 = vsub.f32 %v288_v59, %v290_v61  ;;  %v295_v63 = vmul.f32 1.442695, %v293_v60 }
 0x1e0   : > { %v294_v0 = vsub.f32 0.0, %v292_v62  ;;  %523 = vpow2.f32 %v295_v63 }
 0x1e2   : > { %v297_v1 = vmul.f32 1.442695, %v294_v0 }
 0x1e4   : > { %525 = vpow2.f32 %v297_v1 }
 0x1ed   : > { %v524_v4 = vpop.eup %523 }
 0x1ee   : > { %v299_v6 = vsub.f32 1.0, %v524_v4 }
 0x1f0   : > { %v301_v8 = vmul.f32 %v299_v6, %v299_v6 }
 0x1f1   : > { %v526_v9 = vpop.eup %525 }
 0x1f2   : > { %v300_v11 = vsub.f32 1.0, %v526_v9  ;;  %v303_v12 = vmul.f32 %v301_v8, %v291_v57 }
 0x1f4   : > { %v302_v13 = vmul.f32 %v300_v11, %v300_v11  ;;  %v314_v15 = vsel %vm312_vm3, %v303_v12, 0.0 }
 0x1f5   : > { %v316_v19 = vsel %vm193_vm0, %v314_v15, 0.0 }
 0x1f6   : > { %v304_v14 = vmul.f32 %v302_v13, %v292_v62 }
 0x1f8   : > { %v315_v18 = vsel %vm313_vm4, %v304_v14, 0.0 }
 0x1f9   : > { %v317_v16 = vsel %vm193_vm0, %v315_v18, 0.0 }
 0x1fa   : > { %v318_v20 = vadd.f32 %v317_v16, %v316_v19 }
 0x1fc   : > { %319 = vadd.xlane.f32.xlu1 %v318_v20 }
 0x285   : > { %v320_v21 = vpop.xlane.xlu1 %319 }
 0x286   : > { %v321_v22 = vrot.slane %v320_v21, 4 }
 0x288   : > { %v322_v23 = vadd.f32 %v321_v22, %v320_v21 }
 0x28a   : > { %v323_v24 = vrot.slane %v322_v23, 2 }
 0x28c   : > { %v324_v25 = vadd.f32 %v323_v24, %v322_v23 }
 0x28e   : > { %v325_v26 = vrot.slane %v324_v25, 1 }
 0x290   : > { %v326_v27 = vadd.f32 %v325_v26, %v324_v25 }
 0x292   : > { %449 = vpush %v326_v27 }
 0x2c3   : > { %s450_s16 = spop %449 }
 0x2c4   : > { %v331_v28 = vstv %s450_s16 }
 0x2c5   : > { %v332_v29 = vsel %vm330_vm7, %v331_v28, 0.0 }
 0x2c6   : > { %333 = vst [vmem:[%s173_s8] sm:$0xff] %v332_v29 }
 0x2c7   : > { %540 = shalt.err (!%p537_p5)
}
 0x2c8   : > { %s541_s28 = scalar_lea.hbm %s713_s23, 128  ;;  %s545_s3 = scalar_lea.hbm %s755_s2, 512 }
 0x2c9   : > { %p542_p6 = scmp.ne.s32.totalorder %s713_s23, %s541_s28  ;;  %p546_p10 = scmp.lt.s32.totalorder %s713_s23, %s755_s2 }
 0x2ca   : > { %p547_p11 = scmp.lt.s32.totalorder %s545_s3, %s541_s28 }
 0x2cb   : > { %p543_p7 = pnand %p542_p6, %p664_p4 }
 0x2cc   : > { %p548_p12 = por %p547_p11, %p546_p10 }
 0x2cd   : > { %p544_p9 = pneg %p543_p7 }
 0x2cf   : > { %p549_p13 = pnand %p548_p12, %p544_p9 }
 0x2d1   : > { %552 = shalt.err (!%p549_p13)
}
 0x2d2   : > { %451 = dma.vmem_to_hbm [thread:$0]  (%p664_p4), %s349_s15, 128, %s713_s23, %s335_s24  }
 0x2d3 PF: > { %p457_p0 = scmp.ge.s32.totalorder %s603_s14, 2  ;;  %s360_s6 = sand.u32 1, %s583_s9  }
 0x2d4   : > { %s361_s7 = scalar_lea.sflag [#allocation6], %s360_s6 }
 0x2d5   : > { %p454_p1 = pnand %p457_p0, %p671_p8 }
 0x2d7   : > { %p455_p2 = pneg %p454_p1 }
 0x2d9   : > { %578 = dma.done.wait (%p455_p2), %s361_s7, 128  }
 0x2da   : > { %580 = vsyncadd (%p455_p2), %s361_s7, 4294967168  ;;  %s15_s14 = sadd.s32 1, %s603_s14   ;;  %s758_s9 = smov %s587_s10 }
 0x2db   : > { %p12_p3 = scmp.ge.s32.totalorder %s15_s14, 6   ;;  %s759_s10 = smov %s591_s11 }
 0x2dc   : > { %s760_s11 = smov %s677_s22  ;;  %s761_s12 = smov %s599_s13 }
 0x2dd   : > { %s762_s13 = smov %s764_s17  ;;  %14 = sbr.rel (!%p12_p3) target bundleno = 4 (0x4), region = 74 }
 0x2e2   :  { %366 = vsyncpa [#allocation6], 1 }
 0x2e3   :  { %368 = vsyncpa [#allocation6 + $0x1], 1 }

</bundles_post_ra>
